<compile_context>
chip_gen: v7x
topology: tpu7x:2x2x1
jax: 0.10.0
libtpu: 0.0.40
codegen_flags: <defaults>
</compile_context>

<pallas_src>
import jax
import jax.numpy as jnp
from jax.experimental import pallas as pl
from jax.experimental.pallas import tpu as pltpu

KH = KW = 3  # fixed 3x3 kernel, stride=1, padding=1


def _round_up(x, m):
    return ((x + m - 1) // m) * m


@jax.jit
def conv2d_fused(x, weight, bias):
    """x: (N, Cin, H, W); weight: (Cout, Cin, 3, 3); bias: (Cout,) -> (N, Cout, H, W)."""
    N, Cin, H, W = x.shape
    Cout = weight.shape[0]
    Hp, Wp = H + 2, W + 2
    K9 = Cin * KH * KW
    Lo = H * Wp                               # flat output length per image (padded width)
    Lo_pad = _round_up(Lo, 128)               # lane-dense output width (unmasked stores)
    Lin = _round_up(2 * Wp + 2 + Lo_pad, 128)  # big enough for every shifted slice

    # ---- wrapper-side layout plumbing (one tiny fused producer; no im2col here) ----
    xf = x.astype(jnp.float32)
    xp = jnp.pad(xf, ((0, 0), (0, 0), (1, 1), (1, 1)))        # (N, Cin, Hp, Wp)
    xq = xp.reshape(N, Cin, Hp * Wp)                          # contiguous (free) reshape
    xq = jnp.pad(xq, ((0, 0), (0, 0), (0, Lin - Hp * Wp)))    # (N, Cin, Lin)

    # im2col weight matrix with the bias folded in as an extra column.
    # Column order ci*9 + ki*3 + kj matches the patch-row order built in-kernel.
    w_aug = jnp.concatenate(
        [weight.reshape(Cout, K9).astype(jnp.float32),
         bias.reshape(Cout, 1).astype(jnp.float32)],
        axis=1)                                               # (Cout, K9 + 1)

    def kernel(w_ref, xq_ref, o_ref, p_ref):
        # p_ref: VMEM scratch (K9+1, Lo_pad) patch matrix; last row = ones (bias).
        p_ref[K9, :] = jnp.ones((Lo_pad,), jnp.float32)
        w = w_ref[...]                                        # (Cout, K9+1), loaded once
        for n in range(N):                                    # small N, unrolled at trace
            # Fused im2col: 9 static shifted slices of the flat padded image.
            # Column q = h*(W+2) + w; tap (ki,kj) lives at flat offset ki*(W+2)+kj.
            for ci in range(Cin):
                for ki in range(KH):
                    for kj in range(KW):
                        t = ci * (KH * KW) + ki * KW + kj
                        off = ki * Wp + kj
                        p_ref[t, :] = xq_ref[n, ci, off:off + Lo_pad]
            # conv + bias as one MXU matmul with f32 accumulation.
            v1 = jnp.dot(w, p_ref[...], preferred_element_type=jnp.float32)  # (Cout, Lo_pad)
            v2 = jnp.maximum(v1, 0.0)                         # relu(v1)
            v3 = v2 * v2                                      # relu(v1) * relu(v1)
            v4 = v3                                           # interpolate == identity (TODO above)
            v5 = v2 * 0.6
            v7 = jax.nn.sigmoid(v4) * 123.0 - 456.0
            v10 = jnp.tanh(v5 + v7) + 1.0
            v11 = jnp.tanh(v2) + v10
            o_ref[n] = v11                                    # full-width unmasked lane store

    out = pl.pallas_call(
        kernel,
        out_shape=jax.ShapeDtypeStruct((N, Cout, Lo_pad), jnp.float32),
        in_specs=[
            pl.BlockSpec(memory_space=pltpu.MemorySpace.VMEM),   # w_aug, whole array
            pl.BlockSpec(memory_space=pltpu.MemorySpace.VMEM),   # flat padded input
        ],
        out_specs=pl.BlockSpec(memory_space=pltpu.MemorySpace.VMEM),
        scratch_shapes=[pltpu.VMEM((K9 + 1, Lo_pad), jnp.float32)],
    )(w_aug, xq)

    # Drop lane-padding tail and the 2 padded-width columns per row (tiny consumer op).
    out = out[:, :, :Lo].reshape(N, Cout, H, Wp)[:, :, :, :W]
    return out


def ref_forward(x, weight, bias):
    """Pure-JAX reference of the PyTorch forward (interpolate treated as identity)."""
    v1 = jax.lax.conv_general_dilated(
        x, weight, window_strides=(1, 1), padding=((1, 1), (1, 1)),
        dimension_numbers=("NCHW", "OIHW", "NCHW")) + bias[None, :, None, None]
    v2 = jnp.maximum(v1, 0.0)
    v3 = v2 * v2
    v4 = v3
    v5 = v2 * 0.6
    v7 = jax.nn.sigmoid(v4) * 123.0 - 456.0
    v10 = jnp.tanh(v5 + v7) + 1.0
    return jnp.tanh(v2) + v10


if __name__ == "__main__":
    key = jax.random.PRNGKey(0)
    k_x, k_w, k_b = jax.random.split(key, 3)

    # Small shapes consistent with Conv2d(1, 5, 3, stride=1, padding=1).
    # W = 30 -> padded width 32, so the flat per-image length 16*32 = 512 is lane-dense;
    # the kernel itself pads any H, W up to a multiple of 128 regardless.
    N, Cin, H, W = 2, 1, 16, 30
    Cout = 5

    x = jax.random.normal(k_x, (N, Cin, H, W), dtype=jnp.float32)

    # Deterministic PyTorch-style init: U(-1/sqrt(fan_in), 1/sqrt(fan_in))
    fan_in = Cin * KH * KW
    bound = 1.0 / (fan_in ** 0.5)
    weight = jax.random.uniform(k_w, (Cout, Cin, KH, KW), jnp.float32, -bound, bound)
    bias = jax.random.uniform(k_b, (Cout,), jnp.float32, -bound, bound)

    out = conv2d_fused(x, weight, bias)
    out = jax.block_until_ready(out)

    ref = ref_forward(x, weight, bias)
    assert out.shape == (N, Cout, H, W)
    assert jnp.allclose(out, ref, atol=1e-4, rtol=1e-4), "mismatch vs JAX reference"

    print("KERNEL_OK")
</pallas_src>

<mosaic_0001>
module attributes {stable_mosaic.version = 11 : i64} {
  func.func @kernel(%arg0: memref<5x10xf32, #tpu.memory_space<vmem>>, %arg1: memref<2x1x640xf32, #tpu.memory_space<vmem>>, %arg2: memref<2x5x512xf32, #tpu.memory_space<vmem>>, %arg3: memref<10x512xf32, #tpu.memory_space<vmem>>) attributes {dimension_semantics = [], scalar_prefetch = 0 : i64, scratch_operands = 1 : i64, tpu.core_type = #tpu.core_type<tc>} {
    %cst = arith.constant 1.000000e+00 : f32
    %0 = vector.broadcast %cst : f32 to vector<512xf32>
    %c9 = arith.constant 9 : index
    %c0 = arith.constant 0 : index
    %1 = vector.load %arg3[%c9, %c0] : memref<10x512xf32, #tpu.memory_space<vmem>>, vector<1x512xf32>
    %2 = vector.shape_cast %1 : vector<1x512xf32> to vector<512xf32>
    %3 = vector.shape_cast %0 : vector<512xf32> to vector<1x512xf32>
    tpu.vector_store %arg3[%c9, %c0], %3 {strides = array<i32>} : memref<10x512xf32, #tpu.memory_space<vmem>>, vector<1x512xf32>,
    %c0_0 = arith.constant 0 : index
    %c0_1 = arith.constant 0 : index
    %4 = vector.load %arg0[%c0_0, %c0_1] : memref<5x10xf32, #tpu.memory_space<vmem>>, vector<5x10xf32>
    %c0_2 = arith.constant 0 : index
    %c0_3 = arith.constant 0 : index
    %c0_4 = arith.constant 0 : index
    %5 = vector.load %arg1[%c0_2, %c0_3, %c0_4] : memref<2x1x640xf32, #tpu.memory_space<vmem>>, vector<1x1x512xf32>
    %6 = vector.shape_cast %5 : vector<1x1x512xf32> to vector<512xf32>
    %c0_5 = arith.constant 0 : index
    %c0_6 = arith.constant 0 : index
    %7 = vector.load %arg3[%c0_5, %c0_6] : memref<10x512xf32, #tpu.memory_space<vmem>>, vector<1x512xf32>
    %8 = vector.shape_cast %7 : vector<1x512xf32> to vector<512xf32>
    %9 = vector.shape_cast %6 : vector<512xf32> to vector<1x512xf32>
    tpu.vector_store %arg3[%c0_5, %c0_6], %9 {strides = array<i32>} : memref<10x512xf32, #tpu.memory_space<vmem>>, vector<1x512xf32>,
    %c0_7 = arith.constant 0 : index
    %c0_8 = arith.constant 0 : index
    %c1 = arith.constant 1 : index
    %10 = vector.load %arg1[%c0_7, %c0_8, %c1] : memref<2x1x640xf32, #tpu.memory_space<vmem>>, vector<1x1x512xf32>
    %11 = vector.shape_cast %10 : vector<1x1x512xf32> to vector<512xf32>
    %c1_9 = arith.constant 1 : index
    %c0_10 = arith.constant 0 : index
    %12 = vector.load %arg3[%c1_9, %c0_10] : memref<10x512xf32, #tpu.memory_space<vmem>>, vector<1x512xf32>
    %13 = vector.shape_cast %12 : vector<1x512xf32> to vector<512xf32>
    %14 = vector.shape_cast %11 : vector<512xf32> to vector<1x512xf32>
    tpu.vector_store %arg3[%c1_9, %c0_10], %14 {strides = array<i32>} : memref<10x512xf32, #tpu.memory_space<vmem>>, vector<1x512xf32>,
    %c0_11 = arith.constant 0 : index
    %c0_12 = arith.constant 0 : index
    %c2 = arith.constant 2 : index
    %15 = vector.load %arg1[%c0_11, %c0_12, %c2] : memref<2x1x640xf32, #tpu.memory_space<vmem>>, vector<1x1x512xf32>
    %16 = vector.shape_cast %15 : vector<1x1x512xf32> to vector<512xf32>
    %c2_13 = arith.constant 2 : index
    %c0_14 = arith.constant 0 : index
    %17 = vector.load %arg3[%c2_13, %c0_14] : memref<10x512xf32, #tpu.memory_space<vmem>>, vector<1x512xf32>
    %18 = vector.shape_cast %17 : vector<1x512xf32> to vector<512xf32>
    %19 = vector.shape_cast %16 : vector<512xf32> to vector<1x512xf32>
    tpu.vector_store %arg3[%c2_13, %c0_14], %19 {strides = array<i32>} : memref<10x512xf32, #tpu.memory_space<vmem>>, vector<1x512xf32>,
    %c0_15 = arith.constant 0 : index
    %c0_16 = arith.constant 0 : index
    %c32 = arith.constant 32 : index
    %20 = vector.load %arg1[%c0_15, %c0_16, %c32] : memref<2x1x640xf32, #tpu.memory_space<vmem>>, vector<1x1x512xf32>
    %21 = vector.shape_cast %20 : vector<1x1x512xf32> to vector<512xf32>
    %c3 = arith.constant 3 : index
    %c0_17 = arith.constant 0 : index
    %22 = vector.load %arg3[%c3, %c0_17] : memref<10x512xf32, #tpu.memory_space<vmem>>, vector<1x512xf32>
    %23 = vector.shape_cast %22 : vector<1x512xf32> to vector<512xf32>
    %24 = vector.shape_cast %21 : vector<512xf32> to vector<1x512xf32>
    tpu.vector_store %arg3[%c3, %c0_17], %24 {strides = array<i32>} : memref<10x512xf32, #tpu.memory_space<vmem>>, vector<1x512xf32>,
    %c0_18 = arith.constant 0 : index
    %c0_19 = arith.constant 0 : index
    %c33 = arith.constant 33 : index
    %25 = vector.load %arg1[%c0_18, %c0_19, %c33] : memref<2x1x640xf32, #tpu.memory_space<vmem>>, vector<1x1x512xf32>
    %26 = vector.shape_cast %25 : vector<1x1x512xf32> to vector<512xf32>
    %c4 = arith.constant 4 : index
    %c0_20 = arith.constant 0 : index
    %27 = vector.load %arg3[%c4, %c0_20] : memref<10x512xf32, #tpu.memory_space<vmem>>, vector<1x512xf32>
    %28 = vector.shape_cast %27 : vector<1x512xf32> to vector<512xf32>
    %29 = vector.shape_cast %26 : vector<512xf32> to vector<1x512xf32>
    tpu.vector_store %arg3[%c4, %c0_20], %29 {strides = array<i32>} : memref<10x512xf32, #tpu.memory_space<vmem>>, vector<1x512xf32>,
    %c0_21 = arith.constant 0 : index
    %c0_22 = arith.constant 0 : index
    %c34 = arith.constant 34 : index
    %30 = vector.load %arg1[%c0_21, %c0_22, %c34] : memref<2x1x640xf32, #tpu.memory_space<vmem>>, vector<1x1x512xf32>
    %31 = vector.shape_cast %30 : vector<1x1x512xf32> to vector<512xf32>
    %c5 = arith.constant 5 : index
    %c0_23 = arith.constant 0 : index
    %32 = vector.load %arg3[%c5, %c0_23] : memref<10x512xf32, #tpu.memory_space<vmem>>, vector<1x512xf32>
    %33 = vector.shape_cast %32 : vector<1x512xf32> to vector<512xf32>
    %34 = vector.shape_cast %31 : vector<512xf32> to vector<1x512xf32>
    tpu.vector_store %arg3[%c5, %c0_23], %34 {strides = array<i32>} : memref<10x512xf32, #tpu.memory_space<vmem>>, vector<1x512xf32>,
    %c0_24 = arith.constant 0 : index
    %c0_25 = arith.constant 0 : index
    %c64 = arith.constant 64 : index
    %35 = vector.load %arg1[%c0_24, %c0_25, %c64] : memref<2x1x640xf32, #tpu.memory_space<vmem>>, vector<1x1x512xf32>
    %36 = vector.shape_cast %35 : vector<1x1x512xf32> to vector<512xf32>
    %c6 = arith.constant 6 : index
    %c0_26 = arith.constant 0 : index
    %37 = vector.load %arg3[%c6, %c0_26] : memref<10x512xf32, #tpu.memory_space<vmem>>, vector<1x512xf32>
    %38 = vector.shape_cast %37 : vector<1x512xf32> to vector<512xf32>
    %39 = vector.shape_cast %36 : vector<512xf32> to vector<1x512xf32>
    tpu.vector_store %arg3[%c6, %c0_26], %39 {strides = array<i32>} : memref<10x512xf32, #tpu.memory_space<vmem>>, vector<1x512xf32>,
    %c0_27 = arith.constant 0 : index
    %c0_28 = arith.constant 0 : index
    %c65 = arith.constant 65 : index
    %40 = vector.load %arg1[%c0_27, %c0_28, %c65] : memref<2x1x640xf32, #tpu.memory_space<vmem>>, vector<1x1x512xf32>
    %41 = vector.shape_cast %40 : vector<1x1x512xf32> to vector<512xf32>
    %c7 = arith.constant 7 : index
    %c0_29 = arith.constant 0 : index
    %42 = vector.load %arg3[%c7, %c0_29] : memref<10x512xf32, #tpu.memory_space<vmem>>, vector<1x512xf32>
    %43 = vector.shape_cast %42 : vector<1x512xf32> to vector<512xf32>
    %44 = vector.shape_cast %41 : vector<512xf32> to vector<1x512xf32>
    tpu.vector_store %arg3[%c7, %c0_29], %44 {strides = array<i32>} : memref<10x512xf32, #tpu.memory_space<vmem>>, vector<1x512xf32>,
    %c0_30 = arith.constant 0 : index
    %c0_31 = arith.constant 0 : index
    %c66 = arith.constant 66 : index
    %45 = vector.load %arg1[%c0_30, %c0_31, %c66] : memref<2x1x640xf32, #tpu.memory_space<vmem>>, vector<1x1x512xf32>
    %46 = vector.shape_cast %45 : vector<1x1x512xf32> to vector<512xf32>
    %c8 = arith.constant 8 : index
    %c0_32 = arith.constant 0 : index
    %47 = vector.load %arg3[%c8, %c0_32] : memref<10x512xf32, #tpu.memory_space<vmem>>, vector<1x512xf32>
    %48 = vector.shape_cast %47 : vector<1x512xf32> to vector<512xf32>
    %49 = vector.shape_cast %46 : vector<512xf32> to vector<1x512xf32>
    tpu.vector_store %arg3[%c8, %c0_32], %49 {strides = array<i32>} : memref<10x512xf32, #tpu.memory_space<vmem>>, vector<1x512xf32>,
    %c0_33 = arith.constant 0 : index
    %c0_34 = arith.constant 0 : index
    %50 = vector.load %arg3[%c0_33, %c0_34] : memref<10x512xf32, #tpu.memory_space<vmem>>, vector<10x512xf32>
    %cst_35 = arith.constant dense<0.000000e+00> : vector<5x512xf32>
    %51 = tpu.matmul %4, %50, %cst_35 {dimension_numbers = #tpu.dot_dimension_numbers<[1], [0], [0], [1], [0, 0, 1, 1], [], []>} : vector<5x10xf32>, vector<10x512xf32>, vector<5x512xf32> -> vector<5x512xf32>
    %cst_36 = arith.constant 0.000000e+00 : f32
    %52 = vector.broadcast %cst_36 : f32 to vector<5x512xf32>
    %53 = arith.maximumf %51, %52 : vector<5x512xf32>
    %54 = arith.mulf %53, %53 : vector<5x512xf32>
    %cst_37 = arith.constant 6.000000e-01 : f32
    %55 = vector.broadcast %cst_37 : f32 to vector<5x512xf32>
    %56 = arith.mulf %53, %55 : vector<5x512xf32>
    %57 = arith.negf %54 : vector<5x512xf32>
    %58 = math.exp %57 : vector<5x512xf32>
    %cst_38 = arith.constant 1.000000e+00 : f32
    %59 = vector.broadcast %cst_38 : f32 to vector<5x512xf32>
    %60 = arith.addf %59, %58 : vector<5x512xf32>
    %61 = arith.divf %59, %60 : vector<5x512xf32>
    %cst_39 = arith.constant 1.230000e+02 : f32
    %62 = vector.broadcast %cst_39 : f32 to vector<5x512xf32>
    %63 = arith.mulf %61, %62 : vector<5x512xf32>
    %cst_40 = arith.constant 4.560000e+02 : f32
    %64 = vector.broadcast %cst_40 : f32 to vector<5x512xf32>
    %65 = arith.subf %63, %64 : vector<5x512xf32>
    %66 = arith.addf %56, %65 : vector<5x512xf32>
    %67 = math.tanh %66 : vector<5x512xf32>
    %cst_41 = arith.constant 1.000000e+00 : f32
    %68 = vector.broadcast %cst_41 : f32 to vector<5x512xf32>
    %69 = arith.addf %67, %68 : vector<5x512xf32>
    %70 = math.tanh %53 : vector<5x512xf32>
    %71 = arith.addf %70, %69 : vector<5x512xf32>
    %c0_42 = arith.constant 0 : index
    %c0_43 = arith.constant 0 : index
    %c0_44 = arith.constant 0 : index
    %72 = vector.load %arg2[%c0_42, %c0_43, %c0_44] : memref<2x5x512xf32, #tpu.memory_space<vmem>>, vector<1x5x512xf32>
    %73 = vector.shape_cast %72 : vector<1x5x512xf32> to vector<5x512xf32>
    %74 = vector.shape_cast %71 : vector<5x512xf32> to vector<1x5x512xf32>
    tpu.vector_store %arg2[%c0_42, %c0_43, %c0_44], %74 {strides = array<i32>} : memref<2x5x512xf32, #tpu.memory_space<vmem>>, vector<1x5x512xf32>,
    %c1_45 = arith.constant 1 : index
    %c0_46 = arith.constant 0 : index
    %c0_47 = arith.constant 0 : index
    %75 = vector.load %arg1[%c1_45, %c0_46, %c0_47] : memref<2x1x640xf32, #tpu.memory_space<vmem>>, vector<1x1x512xf32>
    %76 = vector.shape_cast %75 : vector<1x1x512xf32> to vector<512xf32>
    %c0_48 = arith.constant 0 : index
    %c0_49 = arith.constant 0 : index
    %77 = vector.load %arg3[%c0_48, %c0_49] : memref<10x512xf32, #tpu.memory_space<vmem>>, vector<1x512xf32>
    %78 = vector.shape_cast %77 : vector<1x512xf32> to vector<512xf32>
    %79 = vector.shape_cast %76 : vector<512xf32> to vector<1x512xf32>
    tpu.vector_store %arg3[%c0_48, %c0_49], %79 {strides = array<i32>} : memref<10x512xf32, #tpu.memory_space<vmem>>, vector<1x512xf32>,
    %c1_50 = arith.constant 1 : index
    %c0_51 = arith.constant 0 : index
    %c1_52 = arith.constant 1 : index
    %80 = vector.load %arg1[%c1_50, %c0_51, %c1_52] : memref<2x1x640xf32, #tpu.memory_space<vmem>>, vector<1x1x512xf32>
    %81 = vector.shape_cast %80 : vector<1x1x512xf32> to vector<512xf32>
    %c1_53 = arith.constant 1 : index
    %c0_54 = arith.constant 0 : index
    %82 = vector.load %arg3[%c1_53, %c0_54] : memref<10x512xf32, #tpu.memory_space<vmem>>, vector<1x512xf32>
    %83 = vector.shape_cast %82 : vector<1x512xf32> to vector<512xf32>
    %84 = vector.shape_cast %81 : vector<512xf32> to vector<1x512xf32>
    tpu.vector_store %arg3[%c1_53, %c0_54], %84 {strides = array<i32>} : memref<10x512xf32, #tpu.memory_space<vmem>>, vector<1x512xf32>,
    %c1_55 = arith.constant 1 : index
    %c0_56 = arith.constant 0 : index
    %c2_57 = arith.constant 2 : index
    %85 = vector.load %arg1[%c1_55, %c0_56, %c2_57] : memref<2x1x640xf32, #tpu.memory_space<vmem>>, vector<1x1x512xf32>
    %86 = vector.shape_cast %85 : vector<1x1x512xf32> to vector<512xf32>
    %c2_58 = arith.constant 2 : index
    %c0_59 = arith.constant 0 : index
    %87 = vector.load %arg3[%c2_58, %c0_59] : memref<10x512xf32, #tpu.memory_space<vmem>>, vector<1x512xf32>
    %88 = vector.shape_cast %87 : vector<1x512xf32> to vector<512xf32>
    %89 = vector.shape_cast %86 : vector<512xf32> to vector<1x512xf32>
    tpu.vector_store %arg3[%c2_58, %c0_59], %89 {strides = array<i32>} : memref<10x512xf32, #tpu.memory_space<vmem>>, vector<1x512xf32>,
    %c1_60 = arith.constant 1 : index
    %c0_61 = arith.constant 0 : index
    %c32_62 = arith.constant 32 : index
    %90 = vector.load %arg1[%c1_60, %c0_61, %c32_62] : memref<2x1x640xf32, #tpu.memory_space<vmem>>, vector<1x1x512xf32>
    %91 = vector.shape_cast %90 : vector<1x1x512xf32> to vector<512xf32>
    %c3_63 = arith.constant 3 : index
    %c0_64 = arith.constant 0 : index
    %92 = vector.load %arg3[%c3_63, %c0_64] : memref<10x512xf32, #tpu.memory_space<vmem>>, vector<1x512xf32>
    %93 = vector.shape_cast %92 : vector<1x512xf32> to vector<512xf32>
    %94 = vector.shape_cast %91 : vector<512xf32> to vector<1x512xf32>
    tpu.vector_store %arg3[%c3_63, %c0_64], %94 {strides = array<i32>} : memref<10x512xf32, #tpu.memory_space<vmem>>, vector<1x512xf32>,
    %c1_65 = arith.constant 1 : index
    %c0_66 = arith.constant 0 : index
    %c33_67 = arith.constant 33 : index
    %95 = vector.load %arg1[%c1_65, %c0_66, %c33_67] : memref<2x1x640xf32, #tpu.memory_space<vmem>>, vector<1x1x512xf32>
    %96 = vector.shape_cast %95 : vector<1x1x512xf32> to vector<512xf32>
    %c4_68 = arith.constant 4 : index
    %c0_69 = arith.constant 0 : index
    %97 = vector.load %arg3[%c4_68, %c0_69] : memref<10x512xf32, #tpu.memory_space<vmem>>, vector<1x512xf32>
    %98 = vector.shape_cast %97 : vector<1x512xf32> to vector<512xf32>
    %99 = vector.shape_cast %96 : vector<512xf32> to vector<1x512xf32>
    tpu.vector_store %arg3[%c4_68, %c0_69], %99 {strides = array<i32>} : memref<10x512xf32, #tpu.memory_space<vmem>>, vector<1x512xf32>,
    %c1_70 = arith.constant 1 : index
    %c0_71 = arith.constant 0 : index
    %c34_72 = arith.constant 34 : index
    %100 = vector.load %arg1[%c1_70, %c0_71, %c34_72] : memref<2x1x640xf32, #tpu.memory_space<vmem>>, vector<1x1x512xf32>
    %101 = vector.shape_cast %100 : vector<1x1x512xf32> to vector<512xf32>
    %c5_73 = arith.constant 5 : index
    %c0_74 = arith.constant 0 : index
    %102 = vector.load %arg3[%c5_73, %c0_74] : memref<10x512xf32, #tpu.memory_space<vmem>>, vector<1x512xf32>
    %103 = vector.shape_cast %102 : vector<1x512xf32> to vector<512xf32>
    %104 = vector.shape_cast %101 : vector<512xf32> to vector<1x512xf32>
    tpu.vector_store %arg3[%c5_73, %c0_74], %104 {strides = array<i32>} : memref<10x512xf32, #tpu.memory_space<vmem>>, vector<1x512xf32>,
    %c1_75 = arith.constant 1 : index
    %c0_76 = arith.constant 0 : index
    %c64_77 = arith.constant 64 : index
    %105 = vector.load %arg1[%c1_75, %c0_76, %c64_77] : memref<2x1x640xf32, #tpu.memory_space<vmem>>, vector<1x1x512xf32>
    %106 = vector.shape_cast %105 : vector<1x1x512xf32> to vector<512xf32>
    %c6_78 = arith.constant 6 : index
    %c0_79 = arith.constant 0 : index
    %107 = vector.load %arg3[%c6_78, %c0_79] : memref<10x512xf32, #tpu.memory_space<vmem>>, vector<1x512xf32>
    %108 = vector.shape_cast %107 : vector<1x512xf32> to vector<512xf32>
    %109 = vector.shape_cast %106 : vector<512xf32> to vector<1x512xf32>
    tpu.vector_store %arg3[%c6_78, %c0_79], %109 {strides = array<i32>} : memref<10x512xf32, #tpu.memory_space<vmem>>, vector<1x512xf32>,
    %c1_80 = arith.constant 1 : index
    %c0_81 = arith.constant 0 : index
    %c65_82 = arith.constant 65 : index
    %110 = vector.load %arg1[%c1_80, %c0_81, %c65_82] : memref<2x1x640xf32, #tpu.memory_space<vmem>>, vector<1x1x512xf32>
    %111 = vector.shape_cast %110 : vector<1x1x512xf32> to vector<512xf32>
    %c7_83 = arith.constant 7 : index
    %c0_84 = arith.constant 0 : index
    %112 = vector.load %arg3[%c7_83, %c0_84] : memref<10x512xf32, #tpu.memory_space<vmem>>, vector<1x512xf32>
    %113 = vector.shape_cast %112 : vector<1x512xf32> to vector<512xf32>
    %114 = vector.shape_cast %111 : vector<512xf32> to vector<1x512xf32>
    tpu.vector_store %arg3[%c7_83, %c0_84], %114 {strides = array<i32>} : memref<10x512xf32, #tpu.memory_space<vmem>>, vector<1x512xf32>,
    %c1_85 = arith.constant 1 : index
    %c0_86 = arith.constant 0 : index
    %c66_87 = arith.constant 66 : index
    %115 = vector.load %arg1[%c1_85, %c0_86, %c66_87] : memref<2x1x640xf32, #tpu.memory_space<vmem>>, vector<1x1x512xf32>
    %116 = vector.shape_cast %115 : vector<1x1x512xf32> to vector<512xf32>
    %c8_88 = arith.constant 8 : index
    %c0_89 = arith.constant 0 : index
    %117 = vector.load %arg3[%c8_88, %c0_89] : memref<10x512xf32, #tpu.memory_space<vmem>>, vector<1x512xf32>
    %118 = vector.shape_cast %117 : vector<1x512xf32> to vector<512xf32>
    %119 = vector.shape_cast %116 : vector<512xf32> to vector<1x512xf32>
    tpu.vector_store %arg3[%c8_88, %c0_89], %119 {strides = array<i32>} : memref<10x512xf32, #tpu.memory_space<vmem>>, vector<1x512xf32>,
    %c0_90 = arith.constant 0 : index
    %c0_91 = arith.constant 0 : index
    %120 = vector.load %arg3[%c0_90, %c0_91] : memref<10x512xf32, #tpu.memory_space<vmem>>, vector<10x512xf32>
    %cst_92 = arith.constant dense<0.000000e+00> : vector<5x512xf32>
    %121 = tpu.matmul %4, %120, %cst_92 {dimension_numbers = #tpu.dot_dimension_numbers<[1], [0], [0], [1], [0, 0, 1, 1], [], []>} : vector<5x10xf32>, vector<10x512xf32>, vector<5x512xf32> -> vector<5x512xf32>
    %cst_93 = arith.constant 0.000000e+00 : f32
    %122 = vector.broadcast %cst_93 : f32 to vector<5x512xf32>
    %123 = arith.maximumf %121, %122 : vector<5x512xf32>
    %124 = arith.mulf %123, %123 : vector<5x512xf32>
    %cst_94 = arith.constant 6.000000e-01 : f32
    %125 = vector.broadcast %cst_94 : f32 to vector<5x512xf32>
    %126 = arith.mulf %123, %125 : vector<5x512xf32>
    %127 = arith.negf %124 : vector<5x512xf32>
    %128 = math.exp %127 : vector<5x512xf32>
    %cst_95 = arith.constant 1.000000e+00 : f32
    %129 = vector.broadcast %cst_95 : f32 to vector<5x512xf32>
    %130 = arith.addf %129, %128 : vector<5x512xf32>
    %131 = arith.divf %129, %130 : vector<5x512xf32>
    %cst_96 = arith.constant 1.230000e+02 : f32
    %132 = vector.broadcast %cst_96 : f32 to vector<5x512xf32>
    %133 = arith.mulf %131, %132 : vector<5x512xf32>
    %cst_97 = arith.constant 4.560000e+02 : f32
    %134 = vector.broadcast %cst_97 : f32 to vector<5x512xf32>
    %135 = arith.subf %133, %134 : vector<5x512xf32>
    %136 = arith.addf %126, %135 : vector<5x512xf32>
    %137 = math.tanh %136 : vector<5x512xf32>
    %cst_98 = arith.constant 1.000000e+00 : f32
    %138 = vector.broadcast %cst_98 : f32 to vector<5x512xf32>
    %139 = arith.addf %137, %138 : vector<5x512xf32>
    %140 = math.tanh %123 : vector<5x512xf32>
    %141 = arith.addf %140, %139 : vector<5x512xf32>
    %c1_99 = arith.constant 1 : index
    %c0_100 = arith.constant 0 : index
    %c0_101 = arith.constant 0 : index
    %142 = vector.load %arg2[%c1_99, %c0_100, %c0_101] : memref<2x5x512xf32, #tpu.memory_space<vmem>>, vector<1x5x512xf32>
    %143 = vector.shape_cast %142 : vector<1x5x512xf32> to vector<5x512xf32>
    %144 = vector.shape_cast %141 : vector<5x512xf32> to vector<1x5x512xf32>
    tpu.vector_store %arg2[%c1_99, %c0_100, %c0_101], %144 {strides = array<i32>} : memref<2x5x512xf32, #tpu.memory_space<vmem>>, vector<1x5x512xf32>,
    return
  }
}

</mosaic_0001>

<bundles_post_ra>
// kernel: conv2d_fused.1
= control target key start
LH: loop header
LB: loop body
LE: loop exit
PB: predicated region body
PF: predicated region fallthrough
CT: control target
= control target key end

     0   :  { %s796_s13 = smov 96   ;;  %s797_s14 = smov 127   ;;  %v11_v4 = vlaneseq  ;;  %v800_v9 = vmov 1.0   ;;  %v805_v16 = vmov 0.0   ;;  %vm49_vm1 = vcmask 785408   ;;  %s1027_s1 = inlined_call_operand.vmem [shape: f32[2,1,640], index: 1, kind: input, shape index: {}]   ;;  %s1028_s0 = inlined_call_operand.vmem [shape: f32[5,10], index: 0, kind: input, shape index: {}]   ;;  %s1029_s2 = inlined_call_operand.vmem [shape: f32[2,5,512], index: 2, kind: output, shape index: {}]  }
   0x1   :  { %v44_v0 = vld [vmem:[%s1027_s1] sm:$0x1f]  ;;  %s798_s19 = smov 95   ;;  %s799_s20 = smov 126   ;;  %v672_v12 = vld [vmem:[%s1027_s1 + $0x5] sm:$0x1f]  ;;  %199 = vmatprep.mubr.f32.mxu0 %v805_v16  ;;  %270 = vmatprep.mubr.f32.mxu1 %v805_v16 }
   0x2   :  { %v22_v1 = vld [vmem:[%s1027_s1] sm:$0x1f]  ;;  %46 = vrot.lane.b32.xlu1 %v44_v0, %s796_s13  ;;  %vm841_vm0 = vcmp.lt.s32.totalorder %v11_v4, 512  ;;  %s801_s27 = smov 64   ;;  %s802_s28 = smov 94   ;;  %vm27_vm2 = vcmask 1039360  }
   0x3   :  { %24 = vrot.lane.b32.xlu0 %v22_v1, %s797_s14  ;;  %v55_v2 = vld [vmem:[%s1027_s1] sm:$0x1f]  ;;  %16 = vst.msk [vmem:[#allocation2 + $0x21] ss:$8 sm:$0xf] %vm841_vm0, %v800_v9  ;;  %s803_s5 = smov 62  }
   0x4   :  { %v33_v3 = vld [vmem:[%s1027_s1] sm:$0x1f]  ;;  %s804_s6 = smov 63   ;;  %v671_v13 = vld [vmem:[%s1027_s1 + $0x5] sm:$0x1f]  ;;  %vm60_vm3 = vcmask 777216  }
   0x5   :  { %v77_v5 = vld [vmem:[%s1027_s1] sm:$0x1f]  ;;  %v674_v14 = vld [vmem:[%s1027_s1 + $0x5] sm:$0x1f]  ;;  %vm38_vm4 = vcmask 1031168   ;;  %vm82_vm5 = vcmask 523264  }
   0x6   :  { %57 = vrot.lane.b32.xlu1 %v55_v2, %s798_s19  ;;  %v66_v6 = vld [vmem:[%s1027_s1] sm:$0x1f]  ;;  %v673_v15 = vld [vmem:[%s1027_s1 + $0x5] sm:$0x1f]  ;;  %vm71_vm6 = vcmask 769024   ;;  %vm104_vm7 = vcmask 506880  }
   0x7   :  { %35 = vrot.lane.b32.xlu0 %v33_v3, %s799_s20  ;;  %v19_v8 = vld [vmem:[%s1027_s1] sm:$0xf]  ;;  %v676_v17 = vld [vmem:[%s1027_s1 + $0x5] sm:$0x1f]  ;;  %vm93_vm8 = vcmask 515072   ;;  %vm122_vm9 = vcmask 1041408  }
   0x8   :  { %20 = vst.msk [vmem:[#allocation2] ss:$8 sm:$0xf] %vm841_vm0, %v19_v8  ;;  %v99_v10 = vld [vmem:[%s1027_s1] sm:$0x1f]  ;;  %vm806_vm10 = vmmov 1  }
   0x9   :  { %v88_v11 = vld [vmem:[%s1027_s1] sm:$0x1f]  ;;  %v675_v18 = vld [vmem:[%s1027_s1 + $0x5] sm:$0x1f]  ;;  %vm909_vm11 = vmpackc.low %vm122_vm9, %vm806_vm10  ;;  %vm118_vm12 = vcmask 80896  }
   0xa   :  { %79 = vrot.lane.b32.xlu1 %v77_v5, %s801_s27  ;;  %v678_v19 = vld [vmem:[%s1027_s1 + $0x5] sm:$0x1f] }
   0xb   :  { %68 = vrot.lane.b32.xlu0 %v66_v6, %s802_s28  ;;  %v677_v20 = vld [vmem:[%s1027_s1 + $0x5] sm:$0x1f] }
   0xc   :  { %v670_v54 = vld [vmem:[%s1027_s1 + $0x5] sm:$0xf] }
   0xe   :  { %101 = vrot.lane.b32.xlu1 %v99_v10, %s803_s5 }
   0xf   :  { %90 = vrot.lane.b32.xlu0 %v88_v11, %s804_s6 }
  0x12   :  { %360 = vrot.lane.b32.xlu1 %v672_v12, %s799_s20 }
  0x13   :  { %351 = vrot.lane.b32.xlu0 %v671_v13, %s797_s14 }
  0x16   :  { %378 = vrot.lane.b32.xlu1 %v674_v14, %s798_s19 }
  0x17   :  { %369 = vrot.lane.b32.xlu0 %v673_v15, %s796_s13 }
  0x1a   :  { %396 = vrot.lane.b32.xlu1 %v676_v17, %s801_s27  ;;  %v18_v17 = vld [vmem:[%s1028_s0] sm:$0x1f] }
  0x1b   :  { %387 = vrot.lane.b32.xlu0 %v675_v18, %s802_s28 }
  0x1e   :  { %414 = vrot.lane.b32.xlu1 %v678_v19, %s803_s5 }
  0x1f   :  { %405 = vrot.lane.b32.xlu0 %v677_v20, %s804_s6 }
  0x74   :  { %v47_v21 = vpop.permute.xlu1 %46 }
  0x75   :  { %v25_v22 = vpop.permute.xlu0 %24  ;;  %v48_v23 = vrot.slane %v47_v21, 1 }
  0x76   :  { %v26_v24 = vrot.slane %v25_v22, 1 }
  0x77   :  { %v50_v25 = vsel %vm49_vm1, %v47_v21, %v48_v23 }
  0x78   :  { %v28_v26 = vsel %vm27_vm2, %v25_v22, %v26_v24  ;;  %53 = vst.msk [vmem:[#allocation2 + $0x3] ss:$8 sm:$0xf] %vm841_vm0, %v50_v25  ;;  %v58_v27 = vpop.permute.xlu1 %57 }
  0x79   :  { %31 = vst.msk [vmem:[#allocation2 + $0x1] ss:$8 sm:$0xf] %vm841_vm0, %v28_v26  ;;  %v36_v28 = vpop.permute.xlu0 %35  ;;  %v59_v29 = vrot.slane %v58_v27, 1 }
  0x7a   :  { %v37_v30 = vrot.slane %v36_v28, 1 }
  0x7b   :  { %v61_v31 = vsel %vm60_vm3, %v58_v27, %v59_v29 }
  0x7c   :  { %v39_v32 = vsel %vm38_vm4, %v36_v28, %v37_v30  ;;  %64 = vst.msk [vmem:[#allocation2 + $0x4] ss:$8 sm:$0xf] %vm841_vm0, %v61_v31  ;;  %v80_v33 = vpop.permute.xlu1 %79 }
  0x7d   :  { %42 = vst.msk [vmem:[#allocation2 + $0x2] ss:$8 sm:$0xf] %vm841_vm0, %v39_v32  ;;  %v69_v34 = vpop.permute.xlu0 %68  ;;  %v81_v35 = vrot.slane %v80_v33, 1 }
  0x7e   :  { %v70_v36 = vrot.slane %v69_v34, 1 }
  0x7f   :  { %v83_v37 = vsel %vm82_vm5, %v80_v33, %v81_v35 }
  0x80   :  { %v72_v38 = vsel %vm71_vm6, %v69_v34, %v70_v36  ;;  %86 = vst.msk [vmem:[#allocation2 + $0x6] ss:$8 sm:$0xf] %vm841_vm0, %v83_v37  ;;  %v102_v39 = vpop.permute.xlu1 %101 }
  0x81   :  { %75 = vst.msk [vmem:[#allocation2 + $0x5] ss:$8 sm:$0xf] %vm841_vm0, %v72_v38  ;;  %v91_v40 = vpop.permute.xlu0 %90  ;;  %v103_v41 = vrot.slane %v102_v39, 1 }
  0x82   :  { %v92_v42 = vrot.slane %v91_v40, 1 }
  0x83   :  { %v105_v43 = vsel %vm104_vm7, %v102_v39, %v103_v41 }
  0x84   :  { %v94_v44 = vsel %vm93_vm8, %v91_v40, %v92_v42  ;;  %108 = vst.msk [vmem:[#allocation2 + $0x20] ss:$8 sm:$0xf] %vm841_vm0, %v105_v43  ;;  %v361_v45 = vpop.permute.xlu1 %360 }
  0x85   :  { %97 = vst.msk [vmem:[#allocation2 + $0x7] ss:$8 sm:$0xf] %vm841_vm0, %v94_v44  ;;  %v352_v46 = vpop.permute.xlu0 %351  ;;  %v362_v47 = vrot.slane %v361_v45, 1 }
  0x86   :  { %v353_v48 = vrot.slane %v352_v46, 1 }
  0x87   :  { %v363_v61 = vsel %vm38_vm4, %v361_v45, %v362_v47 }
  0x88   :  { %v379_v49 = vpop.permute.xlu1 %378  ;;  %v354_v62 = vsel %vm27_vm2, %v352_v46, %v353_v48 }
  0x89   :  { %v370_v50 = vpop.permute.xlu0 %369  ;;  %v380_v51 = vrot.slane %v379_v49, 1 }
  0x8a   :  { %v371_v52 = vrot.slane %v370_v50, 1 }
  0x8b   :  { %v381_v58 = vsel %vm60_vm3, %v379_v49, %v380_v51  ;;  %v115_v1 = vld [vmem:[#allocation2 + $0x28] sm:$0x3]  ;;  %v117_v2 = vld [vmem:[#allocation2 + $0x38] sm:$0x3]  ;;  %v114_v8 = vld [vmem:[#allocation2 + $0x20] sm:$0x3] }
  0x8c   :  { %v110_v55 = vld [vmem:[#allocation2] sm:$0xff]  ;;  %v111_v56 = vld [vmem:[#allocation2 + $0x8] sm:$0xff]  ;;  %v112_v57 = vld [vmem:[#allocation2 + $0x10] sm:$0xff]  ;;  %v372_v59 = vsel %vm49_vm1, %v370_v50, %v371_v52  ;;  %v397_v63 = vpop.permute.xlu1 %396 }
  0x8d   :  { %v113_v60 = vld [vmem:[#allocation2 + $0x18] sm:$0xff]  ;;  %v388_v0 = vpop.permute.xlu0 %387  ;;  %v398_v3 = vrot.slane %v397_v63, 1  ;;  %v697_v5 = vpack.c.bf16 %v115_v1, %v111_v56  ;;  %v116_v9 = vld [vmem:[#allocation2 + $0x30] sm:$0x3]  ;;  %v700_v10 = vpack.c.bf16 %v114_v8, %v110_v55 }
  0x8e   :  { %365 = vst.msk [vmem:[#allocation2 + $0x2] ss:$8 sm:$0xf] %vm841_vm0, %v363_v61  ;;  %356 = vst.msk [vmem:[#allocation2 + $0x1] ss:$8 sm:$0xf] %vm841_vm0, %v354_v62  ;;  %v703_v6 = vpack.c.bf16 %v117_v2, %v113_v60  ;;  %v706_v11 = vpack.c.bf16 %v116_v9, %v112_v57 }
  0x8f   :  { %383 = vst.msk [vmem:[#allocation2 + $0x4] ss:$8 sm:$0xf] %vm841_vm0, %v381_v58  ;;  %374 = vst.msk [vmem:[#allocation2 + $0x3] ss:$8 sm:$0xf] %vm841_vm0, %v372_v59  ;;  %v399_v12 = vsel %vm82_vm5, %v397_v63, %v398_v3  ;;  %699 = vmatprep.subr.msk.bf16.mxu0 %vm909_vm11, %v697_v5 }
  0x90   :  { %v389_v4 = vrot.slane %v388_v0, 1  ;;  %347 = vst.msk [vmem:[#allocation2] ss:$8 sm:$0xf] %vm841_vm0, %v670_v54  ;;  %705 = vmatprep.subr.msk.bf16.mxu1 %vm909_vm11, %v703_v6  ;;  %702 = vmatpush1.bf16.msk.msra.mxu0 %vm909_vm11, %v700_v10  ;;  %v415_v14 = vpop.permute.xlu1 %414 }
  0x91   :  { %401 = vst.msk [vmem:[#allocation2 + $0x6] ss:$8 sm:$0xf] %vm841_vm0, %v399_v12  ;;  %708 = vmatpush1.bf16.msk.msra.mxu1 %vm909_vm11, %v706_v11  ;;  %v406_v15 = vpop.permute.xlu0 %405  ;;  %v416_v18 = vrot.slane %v415_v14, 1 }
  0x92   :  { %v390_v13 = vsel %vm71_vm6, %v388_v0, %v389_v4  ;;  %v407_v19 = vrot.slane %v406_v15, 1 }
  0x93   :  { %392 = vst.msk [vmem:[#allocation2 + $0x5] ss:$8 sm:$0xf] %vm841_vm0, %v390_v13  ;;  %v417_v20 = vsel %vm104_vm7, %v415_v14, %v416_v18  ;;  %658 = vmatmul.mubr.msk.f32.vlgmr.msra.gmra.mrb[0].mxu0 %vm118_vm12, %v18_v17 }
  0x94   :  { %v408_v21 = vsel %vm93_vm8, %v406_v15, %v407_v19  ;;  %661 = vmatmul.mubr.msk.f32.vlgmr.msra.gmra.mrb[0].mxu1 %vm118_vm12, %v18_v17  ;;  %419 = vst.msk [vmem:[#allocation2 + $0x20] ss:$8 sm:$0xf] %vm841_vm0, %v417_v20  ;;  %505 = vmatprep.mubr.f32.mxu0 %v805_v16 }
  0x95   :  { %410 = vst.msk [vmem:[#allocation2 + $0x7] ss:$8 sm:$0xf] %vm841_vm0, %v408_v21  ;;  %576 = vmatprep.mubr.f32.mxu1 %v805_v16 }
  0x9b   :  { %v426_v23 = vld [vmem:[#allocation2 + $0x28] sm:$0x3]  ;;  %v428_v26 = vld [vmem:[#allocation2 + $0x38] sm:$0x3]  ;;  %v425_v28 = vld [vmem:[#allocation2 + $0x20] sm:$0x3] }
  0x9c   :  { %v422_v22 = vld [vmem:[#allocation2 + $0x8] sm:$0xff]  ;;  %v424_v24 = vld [vmem:[#allocation2 + $0x18] sm:$0xff]  ;;  %v421_v27 = vld [vmem:[#allocation2] sm:$0xff] }
  0x9d   :  { %v709_v25 = vpack.c.bf16 %v426_v23, %v422_v22  ;;  %v715_v29 = vpack.c.bf16 %v428_v26, %v424_v24  ;;  %v712_v30 = vpack.c.bf16 %v425_v28, %v421_v27  ;;  %v423_v31 = vld [vmem:[#allocation2 + $0x10] sm:$0xff] }
  0x9e   :  { %v427_v32 = vld [vmem:[#allocation2 + $0x30] sm:$0x3] }
  0x9f   :  { %711 = vmatprep.subr.msk.bf16.mxu0 %vm909_vm11, %v709_v25  ;;  %v718_v7 = vpack.c.bf16 %v427_v32, %v423_v31  ;;  %717 = vmatprep.subr.msk.bf16.mxu1 %vm909_vm11, %v715_v29 }
  0xa0   :  { %714 = vmatpush1.bf16.msk.msra.mxu0 %vm909_vm11, %v712_v30 }
  0xa1   :  { %720 = vmatpush1.bf16.msk.msra.mxu1 %vm909_vm11, %v718_v7 }
  0xa3   :  { %681 = vmatmul.mubr.msk.f32.vlgmr.msra.gmra.mrb[2].mxu0 %vm118_vm12, %v18_v17 }
  0xa4   :  { %684 = vmatmul.mubr.msk.f32.vlgmr.msra.gmra.mrb[2].mxu1 %vm118_vm12, %v18_v17 }
 0x166   :  { %v201_v16 = vpop.f32.mrb[0].mxu0 }
 0x167   :  { %v272_v33 = vpop.f32.mrb[0].mxu1  ;;  %v277_v34 = vmax.f32 %v201_v16, 0.0  ;;  %v203_v36 = vpop.f32.mrb[1].mxu0 }
 0x168   :  { %v279_v35 = vmax.f32 %v272_v33, 0.0  ;;  %v274_v37 = vpop.f32.mrb[1].mxu1  ;;  %v967_v38 = vmax.f32 %v203_v36, 0.0 }
 0x169   :  { %v969_v39 = vmax.f32 %v274_v37, 0.0  ;;  %v281_v40 = vmul.f32 %v277_v34, %v277_v34  ;;  %v285_v15 = vmul.f32 0.6, %v277_v34 }
 0x16a   :  { %v283_v41 = vmul.f32 %v279_v35, %v279_v35  ;;  %v282_v42 = vmul.f32 %v967_v38, %v967_v38  ;;  %v287_v20 = vmul.f32 0.6, %v279_v35  ;;  %v286_v25 = vmul.f32 0.6, %v967_v38 }
 0x16b   :  { %v662_v43 = vmul.f32 -1.442695, %v281_v40  ;;  %v284_v45 = vmul.f32 %v969_v39, %v969_v39  ;;  %v288_v29 = vmul.f32 0.6, %v969_v39 }
 0x16c   :  { %v664_v44 = vmul.f32 -1.442695, %v283_v41  ;;  %v663_v46 = vmul.f32 -1.442695, %v282_v42 }
 0x16d   :  { %732 = vpow2.f32 %v662_v43  ;;  %v665_v47 = vmul.f32 -1.442695, %v284_v45 }
 0x16e   :  { %734 = vpow2.f32 %v664_v44 }
 0x16f   :  { %736 = vpow2.f32 %v663_v46 }
 0x170   :  { %738 = vpow2.f32 %v665_v47 }
 0x176   :  { %v507_v48 = vpop.f32.mrb[2].mxu0 }
 0x177   :  { %v975_v49 = vmax.f32 %v507_v48, 0.0  ;;  %v578_v50 = vpop.f32.mrb[2].mxu1  ;;  %v509_v51 = vpop.f32.mrb[3].mxu0 }
 0x178   :  { %v733_v52 = vpop.eup %732  ;;  %v977_v53 = vmax.f32 %v578_v50, 0.0  ;;  %v979_v54 = vmax.f32 %v509_v51, 0.0  ;;  %v580_v55 = vpop.f32.mrb[3].mxu1 }
 0x179   :  { %v735_v56 = vpop.eup %734  ;;  %v301_v57 = vadd.f32 1.0, %v733_v52  ;;  %v587_v58 = vmul.f32 %v975_v49, %v975_v49  ;;  %v987_v5 = vmax.f32 %v580_v55, 0.0 }
 0x17a   :  { %v737_v59 = vpop.eup %736  ;;  %v303_v60 = vadd.f32 1.0, %v735_v56  ;;  %v589_v61 = vmul.f32 %v977_v53, %v977_v53  ;;  %v588_v1 = vmul.f32 %v979_v54, %v979_v54 }
 0x17b   :  { %v739_v62 = vpop.eup %738  ;;  %740 = vrcp.f32 %v301_v57  ;;  %v302_v63 = vadd.f32 1.0, %v737_v59  ;;  %v685_v0 = vmul.f32 -1.442695, %v587_v58  ;;  %v590_v6 = vmul.f32 %v987_v5, %v987_v5 }
 0x17c   :  { %742 = vrcp.f32 %v303_v60  ;;  %v304_v2 = vadd.f32 1.0, %v739_v62  ;;  %v687_v3 = vmul.f32 -1.442695, %v589_v61  ;;  %v686_v4 = vmul.f32 -1.442695, %v588_v1 }
 0x17d   :  { %744 = vrcp.f32 %v302_v63  ;;  %v688_v8 = vmul.f32 -1.442695, %v590_v6  ;;  %v591_v61 = vmul.f32 0.6, %v975_v49 }
 0x17e   :  { %746 = vrcp.f32 %v304_v2 }
 0x17f   :  { %748 = vpow2.f32 %v685_v0  ;;  %v593_v0 = vmul.f32 0.6, %v977_v53 }
 0x180   :  { %750 = vpow2.f32 %v687_v3 }
 0x181   :  { %752 = vpow2.f32 %v686_v4  ;;  %v592_v4 = vmul.f32 0.6, %v979_v54 }
 0x182   :  { %754 = vpow2.f32 %v688_v8 }
 0x183   :  { %756 = vtanh.f32 %v277_v34 }
 0x184   :  { %758 = vtanh.f32 %v279_v35 }
 0x185   :  { %v741_v9 = vpop.eup %740  ;;  %760 = vtanh.f32 %v967_v38 }
 0x186   :  { %v743_v10 = vpop.eup %742  ;;  %v313_v11 = vmul.f32 123.0, %v741_v9  ;;  %762 = vtanh.f32 %v969_v39  ;;  %v594_v9 = vmul.f32 0.6, %v987_v5 }
 0x187   :  { %v745_v12 = vpop.eup %744  ;;  %v315_v13 = vmul.f32 123.0, %v743_v10 }
 0x188   :  { %v747_v14 = vpop.eup %746  ;;  %v666_v17 = vadd.f32 -456.0, %v313_v11  ;;  %v314_v18 = vmul.f32 123.0, %v745_v12 }
 0x189   :  { %v749_v19 = vpop.eup %748  ;;  %v668_v21 = vadd.f32 -456.0, %v315_v13  ;;  %v316_v22 = vmul.f32 123.0, %v747_v14 }
 0x18a   :  { %v751_v23 = vpop.eup %750  ;;  %v321_v24 = vadd.f32 %v666_v17, %v285_v15  ;;  %v667_v26 = vadd.f32 -456.0, %v314_v18  ;;  %v607_v32 = vadd.f32 1.0, %v749_v19 }
 0x18b   :  { %v753_v27 = vpop.eup %752  ;;  %v323_v28 = vadd.f32 %v668_v21, %v287_v20  ;;  %v669_v30 = vadd.f32 -456.0, %v316_v22  ;;  %v609_v33 = vadd.f32 1.0, %v751_v23 }
 0x18c   :  { %764 = vtanh.f32 %v321_v24  ;;  %v322_v31 = vadd.f32 %v667_v26, %v286_v25  ;;  %v755_v7 = vpop.eup %754  ;;  %v608_v34 = vadd.f32 1.0, %v753_v27 }
 0x18d   :  { %766 = vtanh.f32 %v323_v28  ;;  %v324_v16 = vadd.f32 %v669_v30, %v288_v29  ;;  %v610_v35 = vadd.f32 1.0, %v755_v7  ;;  %v757_v36 = vpop.eup %756 }
 0x18e   :  { %768 = vtanh.f32 %v322_v31  ;;  %v759_v37 = vpop.eup %758 }
 0x18f   :  { %770 = vtanh.f32 %v324_v16  ;;  %v761_v38 = vpop.eup %760 }
 0x190   :  { %772 = vrcp.f32 %v607_v32  ;;  %v763_v40 = vpop.eup %762 }
 0x191   :  { %774 = vrcp.f32 %v609_v33 }
 0x192   :  { %776 = vrcp.f32 %v608_v34 }
 0x193   :  { %778 = vrcp.f32 %v610_v35 }
 0x194   :  { %780 = vtanh.f32 %v975_v49 }
 0x195   :  { %782 = vtanh.f32 %v977_v53 }
 0x196   :  { %v765_v39 = vpop.eup %764 }
 0x197   :  { %v767_v41 = vpop.eup %766  ;;  %v329_v42 = vadd.f32 1.0, %v765_v39 }
 0x198   :  { %v769_v43 = vpop.eup %768  ;;  %v331_v44 = vadd.f32 1.0, %v767_v41 }
 0x199   :  { %v771_v45 = vpop.eup %770  ;;  %v337_v46 = vadd.f32 %v757_v36, %v329_v42  ;;  %v330_v47 = vadd.f32 1.0, %v769_v43 }
 0x19a   :  { %v773_v48 = vpop.eup %772  ;;  %v339_v50 = vadd.f32 %v759_v37, %v331_v44  ;;  %v332_v51 = vadd.f32 1.0, %v771_v45 }
 0x19b   :  { %v775_v52 = vpop.eup %774  ;;  %341 = vst [vmem:[%s1029_s2] sm:$0x1f] %v337_v46  ;;  %v338_v55 = vadd.f32 %v761_v38, %v330_v47  ;;  %v619_v56 = vmul.f32 123.0, %v773_v48 }
 0x19c   :  { %v777_v57 = vpop.eup %776  ;;  %343 = vst [vmem:[%s1029_s2 + $0x10] sm:$0x1f] %v339_v50  ;;  %v340_v58 = vadd.f32 %v763_v40, %v332_v51  ;;  %v621_v59 = vmul.f32 123.0, %v775_v52 }
 0x19d   :  { %v779_v60 = vpop.eup %778  ;;  %342 = vst [vmem:[%s1029_s2 + $0x8] sm:$0x1f] %v338_v55  ;;  %v689_v62 = vadd.f32 -456.0, %v619_v56  ;;  %v620_v63 = vmul.f32 123.0, %v777_v57 }
 0x19e   :  { %344 = vst [vmem:[%s1029_s2 + $0x18] sm:$0x1f] %v340_v58  ;;  %v691_v1 = vadd.f32 -456.0, %v621_v59  ;;  %v622_v2 = vmul.f32 123.0, %v779_v60  ;;  %v781_v49 = vpop.eup %780 }
 0x19f   :  { %v627_v3 = vadd.f32 %v689_v62, %v591_v61  ;;  %v690_v6 = vadd.f32 -456.0, %v620_v63  ;;  %v783_v13 = vpop.eup %782 }
 0x1a0   :  { %v629_v8 = vadd.f32 %v691_v1, %v593_v0  ;;  %v692_v10 = vadd.f32 -456.0, %v622_v2 }
 0x1a1   :  { %784 = vtanh.f32 %v627_v3  ;;  %v628_v11 = vadd.f32 %v690_v6, %v592_v4 }
 0x1a2   :  { %786 = vtanh.f32 %v629_v8  ;;  %v630_v12 = vadd.f32 %v692_v10, %v594_v9 }
 0x1a3   :  { %788 = vtanh.f32 %v628_v11 }
 0x1a4   :  { %790 = vtanh.f32 %v630_v12 }
 0x1a5   :  { %792 = vtanh.f32 %v979_v54 }
 0x1a6   :  { %794 = vtanh.f32 %v987_v5 }
 0x1ab   :  { %v785_v14 = vpop.eup %784 }
 0x1ac   :  { %v787_v15 = vpop.eup %786  ;;  %v635_v17 = vadd.f32 1.0, %v785_v14 }
 0x1ad   :  { %v789_v18 = vpop.eup %788  ;;  %v637_v53 = vadd.f32 1.0, %v787_v15 }
 0x1ae   :  { %v791_v19 = vpop.eup %790  ;;  %v643_v20 = vadd.f32 %v781_v49, %v635_v17  ;;  %v636_v21 = vadd.f32 1.0, %v789_v18 }
 0x1af   :  { %v793_v22 = vpop.eup %792  ;;  %v645_v23 = vadd.f32 %v783_v13, %v637_v53  ;;  %v638_v24 = vadd.f32 1.0, %v791_v19 }
 0x1b0   :  { %v795_v25 = vpop.eup %794  ;;  %693 = vst [vmem:[%s1029_s2 + $0x20] sm:$0x1f] %v643_v20  ;;  %v644_v54 = vadd.f32 %v793_v22, %v636_v21 }
 0x1b1   :  { %695 = vst [vmem:[%s1029_s2 + $0x30] sm:$0x1f] %v645_v23  ;;  %v646_v5 = vadd.f32 %v795_v25, %v638_v24 }
 0x1b2   :  { %694 = vst [vmem:[%s1029_s2 + $0x28] sm:$0x1f] %v644_v54 }
 0x1b3   :  { %696 = vst [vmem:[%s1029_s2 + $0x38] sm:$0x1f] %v646_v5 }

</bundles_post_ra>
